<compile_context>
chip_gen: v7x
topology: tpu7x:2x2x1
jax: 0.10.0
libtpu: 0.0.40
codegen_flags: <defaults>
</compile_context>

<pallas_src>
import functools

import jax
import jax.numpy as jnp
from jax import lax
from jax.experimental import pallas as pl
from jax.experimental.pallas import tpu as pltpu


def _round_up(x: int, m: int) -> int:
    return ((x + m - 1) // m) * m


def _largest_tile(total: int, cap: int) -> int:
    """Largest multiple-of-128 divisor of `total` (itself a multiple of 128) <= cap."""
    if total <= cap:
        return total
    t = (cap // 128) * 128
    while total % t:
        t -= 128
    return t


def _matmul_bias_kernel(p_ref, w_ref, b_ref, o_ref):
    # p_ref: (TM, K) bf16, w_ref: (K, TE) bf16, b_ref: (1, TE) f32,
    # o_ref: (TM, TE).  Single MXU dot with f32 accumulation, bias add fused.
    acc = jnp.dot(p_ref[...], w_ref[...], preferred_element_type=jnp.float32)
    o_ref[...] = (acc + b_ref[...]).astype(o_ref.dtype)


def _matmul_bias_acc_kernel(p_ref, w_ref, b_ref, o_ref, acc_ref):
    # K-split variant: accumulate partial products in an f32 VMEM scratch,
    # add bias and cast only on the last K step.
    k = pl.program_id(2)

    @pl.when(k == 0)
    def _():
        acc_ref[...] = jnp.zeros_like(acc_ref)

    acc_ref[...] += jnp.dot(p_ref[...], w_ref[...],
                            preferred_element_type=jnp.float32)

    @pl.when(k == pl.num_programs(2) - 1)
    def _():
        o_ref[...] = (acc_ref[...] + b_ref[...]).astype(o_ref.dtype)


def patch_embed_forward(x, weight, bias, kernel_size, stride,
                        *, compute_dtype=jnp.bfloat16,
                        tk_cap=1024, te_cap=1024):
    """x: (B, C, H, W); weight: (E, C, kh, kw); bias: (E,) -> (B, Hp, Wp, E)."""
    assert tuple(kernel_size) == tuple(stride), \
        "patch embed assumes kernel_size == stride (non-overlapping patches)"
    B, C, H, W = x.shape
    E, Cw, kh, kw = weight.shape
    assert Cw == C
    Hp, Wp = H // kh, W // kw

    M = B * Hp * Wp
    K = C * kh * kw

    # --- padded / tiled sizes -------------------------------------------------
    K_pad = _round_up(K, 128)          # contraction dim: lane-aligned; zero pad is exact
    E_pad = _round_up(E, 128)          # output lane dim: unmasked, lane-dense stores
    if M <= 1024:
        TM = _round_up(M, 16)          # single M block, minimal padding
    else:
        TM = 512                       # ~85% of HBM roofline per-tile sweet spot
    M_pad = _round_up(M, TM)
    TE = _largest_tile(E_pad, te_cap)
    TK = _largest_tile(K_pad, tk_cap)
    nm, ne, nk = M_pad // TM, E_pad // TE, K_pad // TK

    # --- host-side glue: patch extraction + layout (cast first -> bf16 traffic)
    xc = x.astype(compute_dtype)
    patches = xc.reshape(B, C, Hp, kh, Wp, kw)
    patches = patches.transpose(0, 2, 4, 1, 3, 5)             # (B, Hp, Wp, C, kh, kw)
    patches = patches.reshape(M, K)                            # (M, K)
    w_mat = weight.reshape(E, K).T.astype(compute_dtype)       # (K, E)
    b_mat = bias.reshape(1, E).astype(jnp.float32)             # (1, E)

    if (M_pad, K_pad) != (M, K):
        patches = jnp.pad(patches, ((0, M_pad - M), (0, K_pad - K)))
    if (K_pad, E_pad) != (K, E):
        w_mat = jnp.pad(w_mat, ((0, K_pad - K), (0, E_pad - E)))
    if E_pad != E:
        b_mat = jnp.pad(b_mat, ((0, 0), (0, E_pad - E)))

    out_dtype = x.dtype
    cost = pl.CostEstimate(
        flops=2 * M_pad * K_pad * E_pad,
        transcendentals=0,
        bytes_accessed=(M_pad * K_pad * patches.dtype.itemsize
                        + K_pad * E_pad * w_mat.dtype.itemsize
                        + M_pad * E_pad * jnp.dtype(out_dtype).itemsize),
    )
    cparams = pltpu.CompilerParams(
        dimension_semantics=("parallel", "parallel") + (("arbitrary",) if nk > 1 else ()),
        vmem_limit_bytes=32 * 1024 * 1024,
    )

    if nk == 1:
        # Common path: whole contraction resident per block, no accumulator.
        grid_spec = pltpu.PrefetchScalarGridSpec(
            num_scalar_prefetch=0,
            grid=(nm, ne),
            in_specs=[
                # LHS tile constant along E -> fetched once per m (no re-DMA).
                pl.BlockSpec((TM, K_pad), lambda m, e: (m, 0)),
                pl.BlockSpec((K_pad, TE), lambda m, e: (0, e)),
                pl.BlockSpec((1, TE), lambda m, e: (0, e)),
            ],
            out_specs=pl.BlockSpec((TM, TE), lambda m, e: (m, e)),
        )
        kernel = _matmul_bias_kernel
    else:
        # Large-K path: reduction axis last, output/acc resident across it.
        grid_spec = pltpu.PrefetchScalarGridSpec(
            num_scalar_prefetch=0,
            grid=(nm, ne, nk),
            in_specs=[
                pl.BlockSpec((TM, TK), lambda m, e, k: (m, k)),
                pl.BlockSpec((TK, TE), lambda m, e, k: (k, e)),
                pl.BlockSpec((1, TE), lambda m, e, k: (0, e)),
            ],
            out_specs=pl.BlockSpec((TM, TE), lambda m, e, k: (m, e)),
            scratch_shapes=[pltpu.VMEM((TM, TE), jnp.float32)],
        )
        kernel = _matmul_bias_acc_kernel

    out = pl.pallas_call(
        kernel,
        out_shape=jax.ShapeDtypeStruct((M_pad, E_pad), out_dtype),
        grid_spec=grid_spec,
        compiler_params=cparams,
        cost_estimate=cost,
    )(patches, w_mat, b_mat)

    return out[:M, :E].reshape(B, Hp, Wp, E)


def _reference(x, weight, bias, kh, kw):
    ref = lax.conv_general_dilated(
        x, weight, window_strides=(kh, kw), padding="VALID",
        dimension_numbers=("NCHW", "OIHW", "NCHW"))
    return jnp.transpose(ref, (0, 2, 3, 1)) + bias.reshape(1, 1, 1, -1)


if __name__ == "__main__":
    # Small shapes consistent with the module: B=2, C=4, H=W=16,
    # kernel_size=stride=(4,4), embed_dim=32.
    B, C, H, W = 2, 4, 16, 16
    kh, kw = 4, 4
    E = 32

    key = jax.random.PRNGKey(0)
    kx, kwt, kb = jax.random.split(key, 3)
    x = jax.random.normal(kx, (B, C, H, W), dtype=jnp.float32)
    weight = jax.random.normal(kwt, (E, C, kh, kw), dtype=jnp.float32) * 0.02
    bias = jax.random.normal(kb, (E,), dtype=jnp.float32) * 0.02

    fwd = jax.jit(functools.partial(patch_embed_forward,
                                    kernel_size=(kh, kw), stride=(kh, kw)))
    out = jax.block_until_ready(fwd(x, weight, bias))
    ref = _reference(x, weight, bias, kh, kw)
    assert out.shape == (B, H // kh, W // kw, E), out.shape
    # bf16 operands + f32 accumulation -> bf16-level tolerance vs f32 reference.
    assert jnp.allclose(out.astype(jnp.float32), ref, atol=2e-2, rtol=2e-2)

    # Also exercise the K-split (accumulator) path: C=8, 8x8 patches -> K=512,
    # tk_cap=128 forces nk=4.
    B2, C2, H2, W2, k2, E2 = 2, 8, 16, 16, 8, 64
    kx2, kw2, kb2 = jax.random.split(jax.random.PRNGKey(0), 3)
    x2 = jax.random.normal(kx2, (B2, C2, H2, W2), dtype=jnp.float32)
    wt2 = jax.random.normal(kw2, (E2, C2, k2, k2), dtype=jnp.float32) * 0.02
    b2 = jax.random.normal(kb2, (E2,), dtype=jnp.float32) * 0.02
    fwd2 = jax.jit(functools.partial(patch_embed_forward,
                                     kernel_size=(k2, k2), stride=(k2, k2),
                                     tk_cap=128))
    out2 = jax.block_until_ready(fwd2(x2, wt2, b2))
    ref2 = _reference(x2, wt2, b2, k2, k2)
    assert out2.shape == (B2, H2 // k2, W2 // k2, E2), out2.shape
    assert jnp.allclose(out2.astype(jnp.float32), ref2, atol=2e-2, rtol=2e-2)

    print("KERNEL_OK")
</pallas_src>

<mosaic_0001>
module attributes {stable_mosaic.version = 11 : i64} {
  func.func @_matmul_bias_kernel(%arg0: i32, %arg1: i32, %arg2: memref<32x128xbf16, #tpu.memory_space<vmem>>, %arg3: memref<128x128xbf16, #tpu.memory_space<vmem>>, %arg4: memref<1x128xf32, #tpu.memory_space<vmem>>, %arg5: memref<32x128xf32, #tpu.memory_space<vmem>>) attributes {dimension_semantics = [#tpu.dimension_semantics<parallel>, #tpu.dimension_semantics<parallel>], iteration_bounds = array<i64: 1, 1>, scalar_prefetch = 0 : i64, scratch_operands = 0 : i64, tpu.core_type = #tpu.core_type<tc>, window_params = [{transform_indices = @transform_0, window_bounds = array<i64: 32, 128>}, {transform_indices = @transform_1, window_bounds = array<i64: 128, 128>}, {transform_indices = @transform_2, window_bounds = array<i64: 1, 128>}, {transform_indices = @transform_3, window_bounds = array<i64: 32, 128>}]} {
    %c0 = arith.constant 0 : index
    %c0_0 = arith.constant 0 : index
    %0 = vector.load %arg2[%c0, %c0_0] : memref<32x128xbf16, #tpu.memory_space<vmem>>, vector<32x128xbf16>
    %c0_1 = arith.constant 0 : index
    %c0_2 = arith.constant 0 : index
    %1 = vector.load %arg3[%c0_1, %c0_2] : memref<128x128xbf16, #tpu.memory_space<vmem>>, vector<128x128xbf16>
    %cst = arith.constant dense<0.000000e+00> : vector<32x128xf32>
    %2 = tpu.matmul %0, %1, %cst {dimension_numbers = #tpu.dot_dimension_numbers<[1], [0], [0], [1], [0, 0, 1, 1], [], []>} : vector<32x128xbf16>, vector<128x128xbf16>, vector<32x128xf32> -> vector<32x128xf32>
    %c0_3 = arith.constant 0 : index
    %c0_4 = arith.constant 0 : index
    %3 = vector.load %arg4[%c0_3, %c0_4] : memref<1x128xf32, #tpu.memory_space<vmem>>, vector<1x128xf32>
    %4 = vector.broadcast %3 : vector<1x128xf32> to vector<32x128xf32>
    %5 = arith.addf %2, %4 : vector<32x128xf32>
    %c0_5 = arith.constant 0 : index
    %c0_6 = arith.constant 0 : index
    %6 = vector.load %arg5[%c0_5, %c0_6] : memref<32x128xf32, #tpu.memory_space<vmem>>, vector<32x128xf32>
    tpu.vector_store %arg5[%c0_5, %c0_6], %5 {strides = array<i32>} : memref<32x128xf32, #tpu.memory_space<vmem>>, vector<32x128xf32>,
    return
  }
  func.func @transform_0(%arg0: i32, %arg1: i32) -> (i32, i32) {
    %c0_i32 = arith.constant 0 : i32
    %c0_i32_0 = arith.constant 0 : i32
    return %arg0, %c0_i32 : i32, i32
  }
  func.func @transform_1(%arg0: i32, %arg1: i32) -> (i32, i32) {
    %c0_i32 = arith.constant 0 : i32
    %c0_i32_0 = arith.constant 0 : i32
    return %c0_i32, %arg1 : i32, i32
  }
  func.func @transform_2(%arg0: i32, %arg1: i32) -> (i32, i32) {
    %c0_i32 = arith.constant 0 : i32
    %c0_i32_0 = arith.constant 0 : i32
    return %c0_i32, %arg1 : i32, i32
  }
  func.func @transform_3(%arg0: i32, %arg1: i32) -> (i32, i32) {
    %c0_i32 = arith.constant 0 : i32
    return %arg0, %arg1 : i32, i32
  }
}

</mosaic_0001>

<bundles_post_ra>
// kernel: patch_embed_forward.1
= control target key start
LH: loop header
LB: loop body
LE: loop exit
PB: predicated region body
PF: predicated region fallthrough
CT: control target
= control target key end

     0   :  { %s318_s0 = inlined_call_operand.vmem [shape: bf16[32,128], index: 0, kind: input, shape index: {}]   ;;  %s319_s1 = inlined_call_operand.vmem [shape: bf16[128,128], index: 1, kind: input, shape index: {}]   ;;  %s320_s2 = inlined_call_operand.vmem [shape: f32[1,128], index: 2, kind: input, shape index: {}]   ;;  %s321_s3 = inlined_call_operand.hbm [shape: f32[32,128], index: 3, kind: output, shape index: {}]  }
   0x1   :  { %v216_v0 = vld [vmem:[%s319_s1] sm:$0xff]   ;;  %v217_v1 = vld [vmem:[%s319_s1 + $0x8] sm:$0xff]   ;;  %v218_v2 = vld [vmem:[%s319_s1 + $0x10] sm:$0xff]  }
   0x2   :  { %193 = vmatprep.subr.bf16.mxu0 %v216_v0  ;;  %v219_v3 = vld [vmem:[%s319_s1 + $0x18] sm:$0xff]   ;;  %v224_v4 = vld [vmem:[%s318_s0] sm:$0xff]  }
   0x3   :  { %194 = vmatpush3.bf16.msra.mxu0 %v216_v0  ;;  %209 = vmatprep.mubr.bf16.mxu0 %v224_v4 }
   0x4   :  { %195 = vmatprep.subr.bf16.mxu0 %v217_v1 }
   0x7   :  { %196 = vmatpush3.bf16.msra.mxu0 %v217_v1 }
   0x8   :  { %197 = vmatprep.subr.bf16.mxu0 %v218_v2 }
   0x9   :  { %8 = vsyncpa [#allocation3], 0  ;;  %v220_v5 = vld [vmem:[%s319_s1 + $0x20] sm:$0xff]   ;;  %v221_v6 = vld [vmem:[%s319_s1 + $0x28] sm:$0xff]   ;;  %s250_s7 = smov [#allocation2]  }
   0xa   :  { %v222_v7 = vld [vmem:[%s319_s1 + $0x30] sm:$0xff]   ;;  %v223_v8 = vld [vmem:[%s319_s1 + $0x38] sm:$0xff]   ;;  %v225_v9 = vld [vmem:[%s318_s0 + $0x8] sm:$0xff]   ;;  %s161_s8 = sshll.u32 %s250_s7, 4  ;;  %s162_s8 = int_to_ptr.vmem [resolvable:$true] %s161_s8 }
   0xb   :  { %198 = vmatpush3.bf16.msra.mxu0 %v218_v2  ;;  %v172_v10 = vld [vmem:[%s320_s2] ss:$0 sm:$0xff]  ;;  %s226_s0 = scalar_lea.vmem %s162_s8, 512  ;;  %p231_p1 = scmp.lt.s32.totalorder %s162_s8, %s162_s8 }
   0xc   :  { %199 = vmatprep.subr.bf16.mxu0 %v219_v3  ;;  %p227_p0 = scmp.ne.s32.totalorder %s162_s8, %s226_s0  ;;  %p232_p2 = scmp.lt.s32.totalorder %s226_s0, %s226_s0 }
   0xe   :  { %p233_p3 = por %p232_p2, %p231_p1 }
   0xf   :  { %200 = vmatpush3.bf16.msra.mxu0 %v219_v3 }
  0x10   :  { %201 = vmatprep.subr.bf16.mxu0 %v220_v5  ;;  %p234_p4 = pnand %p233_p3, %p227_p0 }
  0x13   :  { %202 = vmatpush3.bf16.msra.mxu0 %v220_v5 }
  0x14   :  { %203 = vmatprep.subr.bf16.mxu0 %v221_v6 }
  0x17   :  { %204 = vmatpush3.bf16.msra.mxu0 %v221_v6 }
  0x18   :  { %205 = vmatprep.subr.bf16.mxu0 %v222_v7 }
  0x1b   :  { %206 = vmatpush3.bf16.msra.mxu0 %v222_v7 }
  0x1c   :  { %207 = vmatprep.subr.bf16.mxu0 %v223_v8 }
  0x1f   :  { %208 = vmatpush3.bf16.msra.mxu0 %v223_v8 }
  0x22   :  { %210 = vmatmul.mubr.bf16.vlgmr.msra.gmra.mrb[0].mxu0 %v225_v9 }
  0xf5   :  { %v211_v11 = vpop.f32.mrb[0].mxu0 }
  0xf6   :  { %v146_v12 = vadd.f32 %v211_v11, %v172_v10  ;;  %v137_v13 = vpop.f32.mrb[1].mxu0 }
  0xf7   :  { %v138_v14 = vadd.f32 %v172_v10, %v137_v13  ;;  %v212_v15 = vpop.f32.mrb[2].mxu0 }
  0xf8   :  { %154 = vst [vmem:[#allocation2 + $0x10] sm:$0xff] %v146_v12  ;;  %v149_v16 = vadd.f32 %v212_v15, %v172_v10  ;;  %v140_v17 = vpop.f32.mrb[3].mxu0 }
  0xf9   :  { %152 = vst [vmem:[#allocation2] sm:$0xff] %v138_v14  ;;  %v141_v18 = vadd.f32 %v172_v10, %v140_v17 }
  0xfa   :  { %155 = vst [vmem:[#allocation2 + $0x18] sm:$0xff] %v149_v16 }
  0xfb   :  { %153 = vst [vmem:[#allocation2 + $0x8] sm:$0xff] %v141_v18 }
  0xfc   :  { %237 = shalt.err (!%p234_p4)
}
  0xfd   :  { %s238_s9 = scalar_lea.hbm %s321_s3, 512 }
  0xfe   :  { %p239_p5 = scmp.ne.s32.totalorder %s321_s3, %s238_s9  ;;  %p242_p6 = scmp.lt.u32.totalorder %s238_s9, %s321_s3 }
 0x100   :  { %p244_p7 = pnand %p242_p6, %p239_p5 }
 0x102   :  { %247 = shalt.err (!%p244_p7)
}
 0x103   :  { %s251_s14 = smov 128   ;;  %s252_s15 = smov 8  }
 0x104   :  { %167 = dma.vmem_to_hbm [thread:$0]  %s162_s8, 512, %s321_s3, [#allocation3], %s251_s14, %s251_s14, %s252_s15  }
 0x105   :  { %248 = dma.done.wait [#allocation3], 512  }
 0x106   :  { %249 = vsyncadd [#allocation3], 4294966784 }
 0x107   :  { %171 = vsyncpa [#allocation3], 1 }

</bundles_post_ra>
